<compile_context>
chip_gen: v6e
topology: v6e:2x2x1
jax: 0.10.0
libtpu: 0.0.40
codegen_flags: <defaults>
</compile_context>

<pallas_src>
import jax
import jax.numpy as jnp
from jax.experimental import pallas as pl
from jax.experimental.pallas import tpu as pltpu

INPUT_SIZE = 6
HIDDEN_SIZE = 12
OUTPUT_SIZE = 1


def mlp_kernel(x_ref, w1_ref, b1_ref, w2_ref, b2_ref, o_ref):
    # x_ref : (INPUT_SIZE, TB)      batch on lanes
    # w1_ref: (INPUT_SIZE, HIDDEN_SIZE, 1)   column k of W1 = w1_ref[k] -> (12, 1)
    # b1_ref: (HIDDEN_SIZE, 1)
    # w2_ref: (HIDDEN_SIZE, 1)
    # b2_ref: (1, 1)
    # o_ref : (1, TB)               lane-dense output tile
    tb = x_ref.shape[-1]

    # Layer 1 on the VPU: h[j, b] = b1[j] + sum_k W1[j, k] * x[k, b]
    h = jnp.broadcast_to(b1_ref[...], (HIDDEN_SIZE, tb))
    for k in range(INPUT_SIZE):          # static unroll: 6 FMAs on (12, TB) tiles
        xk = x_ref[k:k + 1, :]           # (1, TB)  row k, lane-dense
        wk = w1_ref[k]                   # (12, 1)  column k of W1
        h = h + wk * xk                  # broadcast both ways -> (12, TB)

    s = jax.nn.sigmoid(h)                # exp on the EUP slot

    # Layer 2: y[b] = b2 + sum_j W2[j] * s[j, b]   (VPU mul + XLU sublane reduce)
    y = jnp.sum(w2_ref[...] * s, axis=0, keepdims=True) + b2_ref[...]   # (1, TB)
    o_ref[...] = y.astype(o_ref.dtype)


def _round_up(n, m):
    return ((n + m - 1) // m) * m


def mlp_forward(x, w1, b1, w2, b2, *, batch_tile=1024):
    """x: (B, 6) f32. Weights in PyTorch layout: w1 (12, 6), b1 (12,), w2 (1, 12), b2 (1,)."""
    B = x.shape[0]

    # Batch tile: multiple of 128 (lane width), capped for small batches.
    tb = min(batch_tile, _round_up(B, 128))
    Bp = _round_up(B, tb)
    n_tiles = Bp // tb

    # Layout flip in the wrapper: pad batch, put batch on lanes.
    x_pad = jnp.pad(x.astype(jnp.float32), ((0, Bp - B), (0, 0)))
    xT = x_pad.T                                             # (6, Bp)

    # Parameter layouts convenient for the kernel.
    w1_cols = w1.T.reshape(INPUT_SIZE, HIDDEN_SIZE, 1).astype(jnp.float32)  # (6, 12, 1)
    b1_col = b1.reshape(HIDDEN_SIZE, 1).astype(jnp.float32)                 # (12, 1)
    w2_col = w2.reshape(HIDDEN_SIZE, 1).astype(jnp.float32)                 # (12, 1)
    b2_col = b2.reshape(1, 1).astype(jnp.float32)                           # (1, 1)

    n_param_bytes = 4 * (INPUT_SIZE * HIDDEN_SIZE + HIDDEN_SIZE + HIDDEN_SIZE + 1)
    cost = pl.CostEstimate(
        flops=2 * Bp * (INPUT_SIZE * HIDDEN_SIZE + HIDDEN_SIZE * OUTPUT_SIZE),
        transcendentals=Bp * HIDDEN_SIZE,
        bytes_accessed=4 * Bp * (INPUT_SIZE + OUTPUT_SIZE) + n_param_bytes,
    )

    out = pl.pallas_call(
        mlp_kernel,
        out_shape=jax.ShapeDtypeStruct((1, Bp), jnp.float32),
        grid_spec=pltpu.PrefetchScalarGridSpec(
            num_scalar_prefetch=0,
            grid=(n_tiles,),
            in_specs=[
                # Streaming input: batch-tiled, lane-dense.
                pl.BlockSpec((INPUT_SIZE, tb), lambda i: (0, i)),
                # Parameters: constant index_map -> fetched once, resident in VMEM.
                pl.BlockSpec((INPUT_SIZE, HIDDEN_SIZE, 1), lambda i: (0, 0, 0)),
                pl.BlockSpec((HIDDEN_SIZE, 1), lambda i: (0, 0)),
                pl.BlockSpec((HIDDEN_SIZE, 1), lambda i: (0, 0)),
                pl.BlockSpec((1, 1), lambda i: (0, 0)),
            ],
            out_specs=pl.BlockSpec((1, tb), lambda i: (0, i)),
        ),
        compiler_params=pltpu.CompilerParams(
            dimension_semantics=("parallel",),   # shard batch tiles across TCs (v7x)
        ),
        cost_estimate=cost,
    )(xT, w1_cols, b1_col, w2_col, b2_col)

    # Back to the PyTorch output layout (B, 1).
    return out[0, :B].reshape(B, OUTPUT_SIZE)


def init_params(key):
    """nn.Linear-style init, PyTorch weight layout: W is (out_features, in_features)."""
    k1, k2, k3, k4 = jax.random.split(key, 4)
    lim1 = 1.0 / (INPUT_SIZE ** 0.5)
    lim2 = 1.0 / (HIDDEN_SIZE ** 0.5)
    w1 = jax.random.uniform(k1, (HIDDEN_SIZE, INPUT_SIZE), jnp.float32, -lim1, lim1)
    b1 = jax.random.uniform(k2, (HIDDEN_SIZE,), jnp.float32, -lim1, lim1)
    w2 = jax.random.uniform(k3, (OUTPUT_SIZE, HIDDEN_SIZE), jnp.float32, -lim2, lim2)
    b2 = jax.random.uniform(k4, (OUTPUT_SIZE,), jnp.float32, -lim2, lim2)
    return w1, b1, w2, b2


def reference_forward(x, w1, b1, w2, b2):
    h = jax.nn.sigmoid(x @ w1.T + b1)
    return h @ w2.T + b2


if __name__ == "__main__":
    key = jax.random.PRNGKey(0)
    kx, kx2, kp = jax.random.split(key, 3)

    w1, b1, w2, b2 = init_params(kp)

    # Small batch (single grid step, padded to one 128-lane tile).
    B = 8
    x = jax.random.normal(kx, (B, INPUT_SIZE), jnp.float32)
    out = jax.block_until_ready(mlp_forward(x, w1, b1, w2, b2))
    ref = reference_forward(x, w1, b1, w2, b2)
    assert out.shape == (B, OUTPUT_SIZE)
    assert jnp.allclose(out, ref, atol=1e-5, rtol=1e-5)

    # Larger, non-multiple batch to exercise padding + the tiled grid path.
    B2 = 300
    x2 = jax.random.normal(kx2, (B2, INPUT_SIZE), jnp.float32)
    out2 = jax.block_until_ready(mlp_forward(x2, w1, b1, w2, b2, batch_tile=128))
    ref2 = reference_forward(x2, w1, b1, w2, b2)
    assert out2.shape == (B2, OUTPUT_SIZE)
    assert jnp.allclose(out2, ref2, atol=1e-5, rtol=1e-5)

    print("KERNEL_OK")
</pallas_src>

<mosaic_0001>
module attributes {stable_mosaic.version = 11 : i64} {
  func.func @mlp_kernel(%arg0: i32, %arg1: memref<6x128xf32, #tpu.memory_space<vmem>>, %arg2: memref<6x12x1xf32, #tpu.memory_space<vmem>>, %arg3: memref<12x1xf32, #tpu.memory_space<vmem>>, %arg4: memref<12x1xf32, #tpu.memory_space<vmem>>, %arg5: memref<1x1xf32, #tpu.memory_space<vmem>>, %arg6: memref<1x128xf32, #tpu.memory_space<vmem>>) attributes {dimension_semantics = [#tpu.dimension_semantics<parallel>], iteration_bounds = array<i64: 1>, scalar_prefetch = 0 : i64, scratch_operands = 0 : i64, tpu.core_type = #tpu.core_type<tc>, window_params = [{transform_indices = @transform_0, window_bounds = array<i64: 6, 128>}, {pipeline_mode = #tpu.pipeline_mode<synchronous>, transform_indices = @transform_1, window_bounds = array<i64: 6, 12, 1>}, {pipeline_mode = #tpu.pipeline_mode<synchronous>, transform_indices = @transform_2, window_bounds = array<i64: 12, 1>}, {pipeline_mode = #tpu.pipeline_mode<synchronous>, transform_indices = @transform_3, window_bounds = array<i64: 12, 1>}, {pipeline_mode = #tpu.pipeline_mode<synchronous>, transform_indices = @transform_4, window_bounds = array<i64: 1, 1>}, {transform_indices = @transform_5, window_bounds = array<i64: 1, 128>}]} {
    %c0 = arith.constant 0 : index
    %c0_0 = arith.constant 0 : index
    %0 = vector.load %arg3[%c0, %c0_0] : memref<12x1xf32, #tpu.memory_space<vmem>>, vector<12x1xf32>
    %1 = vector.shape_cast %0 : vector<12x1xf32> to vector<12x1xf32>
    %2 = vector.broadcast %1 : vector<12x1xf32> to vector<12x128xf32>
    %c0_1 = arith.constant 0 : index
    %c0_2 = arith.constant 0 : index
    %3 = vector.load %arg1[%c0_1, %c0_2] : memref<6x128xf32, #tpu.memory_space<vmem>>, vector<1x128xf32>
    %c0_3 = arith.constant 0 : index
    %c0_4 = arith.constant 0 : index
    %c0_5 = arith.constant 0 : index
    %4 = vector.load %arg2[%c0_3, %c0_4, %c0_5] : memref<6x12x1xf32, #tpu.memory_space<vmem>>, vector<1x12x1xf32>
    %5 = vector.shape_cast %4 : vector<1x12x1xf32> to vector<12x1xf32>
    %6 = vector.broadcast %5 : vector<12x1xf32> to vector<12x128xf32>
    %7 = vector.broadcast %3 : vector<1x128xf32> to vector<12x128xf32>
    %8 = arith.mulf %6, %7 : vector<12x128xf32>
    %9 = arith.addf %2, %8 : vector<12x128xf32>
    %c1 = arith.constant 1 : index
    %c0_6 = arith.constant 0 : index
    %10 = vector.load %arg1[%c1, %c0_6] : memref<6x128xf32, #tpu.memory_space<vmem>>, vector<1x128xf32>
    %c1_7 = arith.constant 1 : index
    %c0_8 = arith.constant 0 : index
    %c0_9 = arith.constant 0 : index
    %11 = vector.load %arg2[%c1_7, %c0_8, %c0_9] : memref<6x12x1xf32, #tpu.memory_space<vmem>>, vector<1x12x1xf32>
    %12 = vector.shape_cast %11 : vector<1x12x1xf32> to vector<12x1xf32>
    %13 = vector.broadcast %12 : vector<12x1xf32> to vector<12x128xf32>
    %14 = vector.broadcast %10 : vector<1x128xf32> to vector<12x128xf32>
    %15 = arith.mulf %13, %14 : vector<12x128xf32>
    %16 = arith.addf %9, %15 : vector<12x128xf32>
    %c2 = arith.constant 2 : index
    %c0_10 = arith.constant 0 : index
    %17 = vector.load %arg1[%c2, %c0_10] : memref<6x128xf32, #tpu.memory_space<vmem>>, vector<1x128xf32>
    %c2_11 = arith.constant 2 : index
    %c0_12 = arith.constant 0 : index
    %c0_13 = arith.constant 0 : index
    %18 = vector.load %arg2[%c2_11, %c0_12, %c0_13] : memref<6x12x1xf32, #tpu.memory_space<vmem>>, vector<1x12x1xf32>
    %19 = vector.shape_cast %18 : vector<1x12x1xf32> to vector<12x1xf32>
    %20 = vector.broadcast %19 : vector<12x1xf32> to vector<12x128xf32>
    %21 = vector.broadcast %17 : vector<1x128xf32> to vector<12x128xf32>
    %22 = arith.mulf %20, %21 : vector<12x128xf32>
    %23 = arith.addf %16, %22 : vector<12x128xf32>
    %c3 = arith.constant 3 : index
    %c0_14 = arith.constant 0 : index
    %24 = vector.load %arg1[%c3, %c0_14] : memref<6x128xf32, #tpu.memory_space<vmem>>, vector<1x128xf32>
    %c3_15 = arith.constant 3 : index
    %c0_16 = arith.constant 0 : index
    %c0_17 = arith.constant 0 : index
    %25 = vector.load %arg2[%c3_15, %c0_16, %c0_17] : memref<6x12x1xf32, #tpu.memory_space<vmem>>, vector<1x12x1xf32>
    %26 = vector.shape_cast %25 : vector<1x12x1xf32> to vector<12x1xf32>
    %27 = vector.broadcast %26 : vector<12x1xf32> to vector<12x128xf32>
    %28 = vector.broadcast %24 : vector<1x128xf32> to vector<12x128xf32>
    %29 = arith.mulf %27, %28 : vector<12x128xf32>
    %30 = arith.addf %23, %29 : vector<12x128xf32>
    %c4 = arith.constant 4 : index
    %c0_18 = arith.constant 0 : index
    %31 = vector.load %arg1[%c4, %c0_18] : memref<6x128xf32, #tpu.memory_space<vmem>>, vector<1x128xf32>
    %c4_19 = arith.constant 4 : index
    %c0_20 = arith.constant 0 : index
    %c0_21 = arith.constant 0 : index
    %32 = vector.load %arg2[%c4_19, %c0_20, %c0_21] : memref<6x12x1xf32, #tpu.memory_space<vmem>>, vector<1x12x1xf32>
    %33 = vector.shape_cast %32 : vector<1x12x1xf32> to vector<12x1xf32>
    %34 = vector.broadcast %33 : vector<12x1xf32> to vector<12x128xf32>
    %35 = vector.broadcast %31 : vector<1x128xf32> to vector<12x128xf32>
    %36 = arith.mulf %34, %35 : vector<12x128xf32>
    %37 = arith.addf %30, %36 : vector<12x128xf32>
    %c5 = arith.constant 5 : index
    %c0_22 = arith.constant 0 : index
    %38 = vector.load %arg1[%c5, %c0_22] : memref<6x128xf32, #tpu.memory_space<vmem>>, vector<1x128xf32>
    %c5_23 = arith.constant 5 : index
    %c0_24 = arith.constant 0 : index
    %c0_25 = arith.constant 0 : index
    %39 = vector.load %arg2[%c5_23, %c0_24, %c0_25] : memref<6x12x1xf32, #tpu.memory_space<vmem>>, vector<1x12x1xf32>
    %40 = vector.shape_cast %39 : vector<1x12x1xf32> to vector<12x1xf32>
    %41 = vector.broadcast %40 : vector<12x1xf32> to vector<12x128xf32>
    %42 = vector.broadcast %38 : vector<1x128xf32> to vector<12x128xf32>
    %43 = arith.mulf %41, %42 : vector<12x128xf32>
    %44 = arith.addf %37, %43 : vector<12x128xf32>
    %45 = arith.negf %44 : vector<12x128xf32>
    %46 = math.exp %45 : vector<12x128xf32>
    %cst = arith.constant 1.000000e+00 : f32
    %47 = vector.broadcast %cst : f32 to vector<12x128xf32>
    %48 = arith.addf %47, %46 : vector<12x128xf32>
    %49 = arith.divf %47, %48 : vector<12x128xf32>
    %c0_26 = arith.constant 0 : index
    %c0_27 = arith.constant 0 : index
    %50 = vector.load %arg4[%c0_26, %c0_27] : memref<12x1xf32, #tpu.memory_space<vmem>>, vector<12x1xf32>
    %51 = vector.broadcast %50 : vector<12x1xf32> to vector<12x128xf32>
    %52 = arith.mulf %51, %49 : vector<12x128xf32>
    %cst_28 = arith.constant dense<0.000000e+00> : vector<128xf32>
    %53 = vector.multi_reduction <add>, %52, %cst_28 [0] : vector<12x128xf32> to vector<128xf32>
    %54 = vector.shape_cast %53 : vector<128xf32> to vector<1x128xf32>
    %c0_29 = arith.constant 0 : index
    %c0_30 = arith.constant 0 : index
    %55 = vector.load %arg5[%c0_29, %c0_30] : memref<1x1xf32, #tpu.memory_space<vmem>>, vector<1x1xf32>
    %56 = vector.broadcast %55 : vector<1x1xf32> to vector<1x128xf32>
    %57 = arith.addf %54, %56 : vector<1x128xf32>
    %c0_31 = arith.constant 0 : index
    %c0_32 = arith.constant 0 : index
    %58 = vector.load %arg6[%c0_31, %c0_32] : memref<1x128xf32, #tpu.memory_space<vmem>>, vector<1x128xf32>
    tpu.vector_store %arg6[%c0_31, %c0_32], %57 {strides = array<i32>} : memref<1x128xf32, #tpu.memory_space<vmem>>, vector<1x128xf32>,
    return
  }
  func.func @transform_0(%arg0: i32) -> (i32, i32) {
    %c0_i32 = arith.constant 0 : i32
    %c0_i32_0 = arith.constant 0 : i32
    return %c0_i32, %arg0 : i32, i32
  }
  func.func @transform_1(%arg0: i32) -> (i32, i32, i32) {
    %c0_i32 = arith.constant 0 : i32
    %c0_i32_0 = arith.constant 0 : i32
    %c0_i32_1 = arith.constant 0 : i32
    %c0_i32_2 = arith.constant 0 : i32
    return %c0_i32, %c0_i32_0, %c0_i32_1 : i32, i32, i32
  }
  func.func @transform_2(%arg0: i32) -> (i32, i32) {
    %c0_i32 = arith.constant 0 : i32
    %c0_i32_0 = arith.constant 0 : i32
    %c0_i32_1 = arith.constant 0 : i32
    return %c0_i32, %c0_i32_0 : i32, i32
  }
  func.func @transform_3(%arg0: i32) -> (i32, i32) {
    %c0_i32 = arith.constant 0 : i32
    %c0_i32_0 = arith.constant 0 : i32
    %c0_i32_1 = arith.constant 0 : i32
    return %c0_i32, %c0_i32_0 : i32, i32
  }
  func.func @transform_4(%arg0: i32) -> (i32, i32) {
    %c0_i32 = arith.constant 0 : i32
    %c0_i32_0 = arith.constant 0 : i32
    %c0_i32_1 = arith.constant 0 : i32
    return %c0_i32, %c0_i32_0 : i32, i32
  }
  func.func @transform_5(%arg0: i32) -> (i32, i32) {
    %c0_i32 = arith.constant 0 : i32
    %c0_i32_0 = arith.constant 0 : i32
    return %c0_i32, %arg0 : i32, i32
  }
}

</mosaic_0001>

<bundles_post_ra>
// kernel: tpu_custom_call.1
= control target key start
LH: loop header
LB: loop body
LE: loop exit
PB: predicated region body
PF: predicated region fallthrough
CT: control target
= control target key end

     0   :  { %s383_s0 = inlined_call_operand.vmem [shape: f32[6,128], index: 0, kind: input, shape index: {}]   ;;  %s384_s1 = inlined_call_operand.vmem [shape: f32[6,12,1], index: 1, kind: input, shape index: {}]   ;;  %s385_s2 = inlined_call_operand.vmem [shape: f32[12,1], index: 2, kind: input, shape index: {}]   ;;  %s386_s3 = inlined_call_operand.vmem [shape: f32[12,1], index: 3, kind: input, shape index: {}]   ;;  %s387_s4 = inlined_call_operand.<no memory space> [shape: f32[1,1], index: 4, kind: input, shape index: {}]   ;;  %s388_s5 = inlined_call_operand.hbm [shape: f32[1,128], index: 5, kind: output, shape index: {}]  }
   0x1   :  { %v10_v0 = vstv %s387_s4 }
   0x2   :  { %11 = vst [vmem:[#allocation2] sm:$0x1] %v10_v0 }
   0x3   :  { %v37_v1 = vld [vmem:[%s384_s1 + $0x8] sm:$0xf]  ;;  %v279_v3 = vmov 0   ;;  %v36_v4 = vld [vmem:[%s384_s1] sm:$0xff]  ;;  %v229_v5 = vld [vmem:[%s384_s1 + $0x18] sm:$0xf] }
   0x4   :  { %v24_v2 = vld [vmem:[%s385_s2 + $0x8] sm:$0xf]  ;;  %248 = vset.pattern.permute.xlu1 %v279_v3  ;;  %247 = vset.pattern.permute.xlu0 %v279_v3 }
   0x5   :  { %45 = vperm.xlu0 %247, %v37_v1   ;;  %32 = vperm.xlu1 %248, %v24_v2  }
   0x9   :  { %40 = vperm.xlu0 %247, %v36_v4   ;;  %67 = vperm.xlu1 %248, %v229_v5  }
   0xa   :  { %12 = vsyncpa [#allocation4], 0  ;;  %v228_v6 = vld [vmem:[%s384_s1 + $0x10] sm:$0xff]  ;;  %v23_v7 = vld [vmem:[%s385_s2] sm:$0xff]  ;;  %vm192_vm0 = vcmask 1043456  }
   0xb   :  { %v231_v8 = vld [vmem:[%s384_s1 + $0x20] sm:$0xff]  ;;  %v232_v9 = vld [vmem:[%s384_s1 + $0x28] sm:$0xf]  ;;  %v234_v10 = vld [vmem:[%s384_s1 + $0x30] sm:$0xff] }
   0xc   :  { %v235_v11 = vld [vmem:[%s384_s1 + $0x38] sm:$0xf]  ;;  %v237_v12 = vld [vmem:[%s384_s1 + $0x40] sm:$0xff]  ;;  %v238_v13 = vld [vmem:[%s384_s1 + $0x48] sm:$0xf] }
   0xd   :  { %62 = vperm.xlu1 %248, %v228_v6   ;;  %27 = vperm.xlu0 %247, %v23_v7   ;;  %v240_v14 = vld [vmem:[%s384_s1 + $0x50] sm:$0xff]  ;;  %v241_v15 = vld [vmem:[%s384_s1 + $0x58] sm:$0xf]  ;;  %v178_v16 = vld [vmem:[%s386_s3] sm:$0xff] }
   0xe   :  { %v179_v17 = vld [vmem:[%s386_s3 + $0x8] sm:$0xf]  ;;  %v201_v18 = vld [vmem:[#allocation2] sm:$0x1]  ;;  %v230_v26 = vld [vmem:[%s383_s0 + $0x1] ss:$0 sm:$0xff] }
   0xf   :  { %v227_v25 = vld [vmem:[%s383_s0] ss:$0 sm:$0xff]  ;;  %v233_v31 = vld [vmem:[%s383_s0 + $0x2] ss:$0 sm:$0xff]  ;;  %v236_v35 = vld [vmem:[%s383_s0 + $0x3] ss:$0 sm:$0xff] }
  0x10   :  { %v239_v41 = vld [vmem:[%s383_s0 + $0x4] ss:$0 sm:$0xff]  ;;  %v242_v52 = vld [vmem:[%s383_s0 + $0x5] ss:$0 sm:$0xff]  ;;  %s280_s0 = smov [#allocation3]  }
  0x11   :  { %84 = vperm.xlu1 %248, %v231_v8   ;;  %89 = vperm.xlu0 %247, %v232_v9   ;;  %s219_s9 = sshll.u32 %s280_s0, 4  ;;  %s220_s9 = int_to_ptr.vmem [resolvable:$true] %s219_s9 }
  0x12   :  { %s257_s10 = scalar_lea.vmem %s220_s9, 16  ;;  %s261_s11 = scalar_lea.vmem %s220_s9, 32 }
  0x13   :  { %p258_p0 = scmp.ne.s32.totalorder %s220_s9, %s257_s10  ;;  %p262_p1 = scmp.lt.s32.totalorder %s220_s9, %s220_s9 }
  0x14   :  { %p263_p2 = scmp.lt.s32.totalorder %s261_s11, %s257_s10 }
  0x15   :  { %106 = vperm.xlu1 %248, %v234_v10   ;;  %111 = vperm.xlu0 %247, %v235_v11  }
  0x16   :  { %p264_p3 = por %p263_p2, %p262_p1 }
  0x18   :  { %p265_p4 = pnand %p264_p3, %p258_p0 }
  0x19   :  { %128 = vperm.xlu1 %248, %v237_v12   ;;  %133 = vperm.xlu0 %247, %v238_v13   ;;  %v207_v13 = vlaneseq }
  0x1d   :  { %150 = vperm.xlu1 %248, %v240_v14   ;;  %155 = vperm.xlu0 %247, %v241_v15  }
  0x21   :  { %182 = vperm.xlu1 %248, %v178_v16   ;;  %187 = vperm.xlu0 %247, %v179_v17   ;;  %v208_v16 = vshrl.u32 %v207_v13, 7 }
  0x25   :  { %204 = vperm.xlu0 %247, %v201_v18   ;;  %v209_v18 = vsub.s32 0, %v208_v16 }
  0x80   :  { %v46_v19 = vpop.permute.xlu0 %45  ;;  %v33_v20 = vpop.permute.xlu1 %32 }
  0x81   :  { %v53_v29 = vmul.f32 %v227_v25, %v46_v19 }
  0x83   :  { %v55_v38 = vadd.f32 %v53_v29, %v33_v20 }
  0x84   :  { %v41_v21 = vpop.permute.xlu0 %40  ;;  %v68_v22 = vpop.permute.xlu1 %67 }
  0x85   :  { %v52_v30 = vmul.f32 %v227_v25, %v41_v21  ;;  %v75_v32 = vmul.f32 %v230_v26, %v68_v22 }
  0x87   :  { %v77_v42 = vadd.f32 %v75_v32, %v55_v38 }
  0x88   :  { %v63_v23 = vpop.permute.xlu1 %62  ;;  %v28_v24 = vpop.permute.xlu0 %27 }
  0x89   :  { %v74_v33 = vmul.f32 %v230_v26, %v63_v23  ;;  %v54_v34 = vadd.f32 %v52_v30, %v28_v24 }
  0x8b   :  { %v76_v43 = vadd.f32 %v74_v33, %v54_v34 }
  0x8c   :  { %v85_v27 = vpop.permute.xlu1 %84  ;;  %v90_v28 = vpop.permute.xlu0 %89 }
  0x8d   :  { %v96_v39 = vmul.f32 %v233_v31, %v85_v27  ;;  %v97_v40 = vmul.f32 %v233_v31, %v90_v28 }
  0x8f   :  { %v98_v48 = vadd.f32 %v96_v39, %v76_v43  ;;  %v99_v49 = vadd.f32 %v97_v40, %v77_v42 }
  0x90   :  { %v107_v36 = vpop.permute.xlu1 %106  ;;  %v112_v37 = vpop.permute.xlu0 %111 }
  0x91   :  { %v118_v44 = vmul.f32 %v236_v35, %v107_v36  ;;  %v119_v45 = vmul.f32 %v236_v35, %v112_v37 }
  0x93   :  { %v120_v53 = vadd.f32 %v118_v44, %v98_v48  ;;  %v121_v54 = vadd.f32 %v119_v45, %v99_v49 }
  0x94   :  { %v129_v46 = vpop.permute.xlu1 %128  ;;  %v134_v47 = vpop.permute.xlu0 %133 }
  0x95   :  { %v140_v50 = vmul.f32 %v239_v41, %v129_v46  ;;  %v141_v51 = vmul.f32 %v239_v41, %v134_v47 }
  0x97   :  { %v142_v57 = vadd.f32 %v140_v50, %v120_v53  ;;  %v143_v58 = vadd.f32 %v141_v51, %v121_v54 }
  0x98   :  { %v151_v55 = vpop.permute.xlu1 %150  ;;  %v156_v56 = vpop.permute.xlu0 %155 }
  0x99   :  { %v162_v59 = vmul.f32 %v242_v52, %v151_v55  ;;  %v163_v60 = vmul.f32 %v242_v52, %v156_v56 }
  0x9b   :  { %v164_v61 = vadd.f32 %v162_v59, %v142_v57  ;;  %v165_v62 = vadd.f32 %v163_v60, %v143_v58 }
  0x9c   :  { %v183_v6 = vpop.permute.xlu1 %182  ;;  %v188_v9 = vpop.permute.xlu0 %187 }
  0x9d   :  { %v243_v63 = vmul.f32 -1.442695, %v164_v61  ;;  %v244_v0 = vmul.f32 -1.442695, %v165_v62 }
  0x9f   :  { %249 = vpow2.f32 %v243_v63 }
  0xa0   :  { %251 = vpow2.f32 %v244_v0  ;;  %v205_v20 = vpop.permute.xlu0 %204 }
  0xa1   :  { %v210_v22 = vrot.slane %v205_v20, %v209_v18 }
  0xac   :  { %v250_v1 = vpop.eup %249 }
  0xad   :  { %v252_v2 = vpop.eup %251  ;;  %v172_v3 = vadd.f32 1.0, %v250_v1 }
  0xae   :  { %v173_v4 = vadd.f32 1.0, %v252_v2 }
  0xaf   :  { %253 = vrcp.f32 %v172_v3 }
  0xb0   :  { %255 = vrcp.f32 %v173_v4 }
  0xbc   :  { %v254_v5 = vpop.eup %253 }
  0xbd   :  { %v256_v7 = vpop.eup %255  ;;  %v190_v8 = vmul.f32 %v254_v5, %v183_v6 }
  0xbe   :  { %v191_v10 = vmul.f32 %v256_v7, %v188_v9 }
  0xc0   :  { %v193_v11 = vsel %vm192_vm0, %v191_v10, 0.0 }
  0xc1   :  { %v194_v12 = vadd.f32 %v193_v11, %v190_v8 }
  0xc3   :  { %v195_v14 = vrot.slane %v194_v12, 4 }
  0xc5   :  { %v196_v15 = vadd.f32 %v195_v14, %v194_v12 }
  0xc7   :  { %v197_v17 = vrot.slane %v196_v15, 2 }
  0xc9   :  { %v198_v19 = vadd.f32 %v197_v17, %v196_v15 }
  0xcb   :  { %v199_v21 = vrot.slane %v198_v19, 1 }
  0xcd   :  { %v200_v23 = vadd.f32 %v199_v21, %v198_v19 }
  0xcf   :  { %v211_v24 = vadd.f32 %v210_v22, %v200_v23 }
  0xd1   :  { %212 = vst [vmem:[#allocation3] sm:$0x1] %v211_v24 }
  0xd2   :  { %268 = shalt.err (!%p265_p4)
}
  0xd3   :  { %222 = dma.vmem_to_hbm [thread:$0]  %s220_s9, 16, %s388_s5, [#allocation4]  }
  0xd4   :  { %277 = dma.done.wait [#allocation4], 16  }
  0xd5   :  { %278 = vsyncadd [#allocation4], 4294967280 }
  0xd6   :  { %226 = vsyncpa [#allocation4], 1 }

</bundles_post_ra>
